<compile_context>
chip_gen: v7x
topology: tpu7x:2x2x1
jax: 0.10.0
libtpu: 0.0.40
codegen_flags: <defaults>
</compile_context>

<pallas_src>
import functools

import jax
import jax.numpy as jnp
import numpy as np
from jax.experimental import pallas as pl
from jax.experimental.pallas import tpu as pltpu

_LANE = 128
_SUBLANE = 8


def _confidence_loss_kernel(pred_ref, true_ref, out_ref, acc_a, acc_s, acc_r, *,
                            h, n, pad_count, weighted, hard_targets):
    pid = pl.program_id(0)
    last = pl.num_programs(0) - 1

    @pl.when(pid == 0)
    def _init():
        acc_a[...] = jnp.zeros_like(acc_a)
        acc_s[...] = jnp.zeros_like(acc_s)
        acc_r[...] = jnp.zeros_like(acc_r)

    pred = pred_ref[...].astype(jnp.float32)   # (tile_rows, 128)
    true = true_ref[...].astype(jnp.float32)   # (tile_rows, 128)

    # Per-element BCE log-term.  The padded tail is (pred=1, true=1) so its
    # contribution is exactly 0 here (no in-kernel mask needed).
    if hard_targets:
        # Single transcendental per element; only valid for targets in {0, 1}.
        bce = jnp.maximum(jnp.log(jnp.where(true > 0.5, pred, 1.0 - pred)), -100.0)
    else:
        # PyTorch binary_cross_entropy clamps each log term at -100.
        log_p = jnp.maximum(jnp.log(pred), -100.0)
        log_1mp = jnp.maximum(jnp.log(1.0 - pred), -100.0)
        bce = log_1mp + true * (log_p - log_1mp)   # == t*log_p + (1-t)*log_1mp

    # Streaming partial sums (scalar accumulators; per-tile reduce is mostly
    # VALU vreg adds with a tiny XLU cascade, overlapped with the EUP logs).
    acc_s[...] += jnp.sum(bce, keepdims=True)            # S = sum_i bce_i
    if weighted:
        acc_a[...] += jnp.sum(true * bce, keepdims=True)  # A = sum_i t_i*bce_i
        acc_r[...] += jnp.sum(true, keepdims=True)        # R = sum_i t_i (+pad)

    @pl.when(pid == last)
    def _finalize():
        s = acc_s[...]                                    # (1, 1)
        if weighted:
            a = acc_a[...]
            r = acc_r[...] - jnp.float32(pad_count)       # remove pad's +1 per elem
            b = s - a                                     # sum_i (1 - t_i) * bce_i
            hf = jnp.float32(h)
            is_zero = r == 0.0
            safe_r = jnp.where(is_zero, 1.0, r)
            w_t = jnp.where(is_zero, 1.0, (hf - r) / (hf * safe_r))  # p1 / r
            w_f = jnp.where(is_zero, 1.0, r / (hf * hf))             # p2 / h
            total = w_t * a + w_f * b
        else:
            total = s
        out_ref[...] = -total / jnp.float32(n)


def confidence_loss(conf_pred, conf_true, weighted=True, hard_targets=False,
                    block_rows=4096):
    """Pallas implementation of ConfidenceLoss.forward (reduction='mean')."""
    h = conf_pred.shape[0]
    n = conf_pred.size

    # Lane/sublane-dense layout: flatten to (rows_pad, 128), rows_pad a
    # multiple of the tile size (itself a multiple of 8).
    rows = -(-n // _LANE)
    rows = ((rows + _SUBLANE - 1) // _SUBLANE) * _SUBLANE
    block_rows = max(_SUBLANE, (block_rows // _SUBLANE) * _SUBLANE)
    tile_rows = min(block_rows, rows)
    rows_pad = ((rows + tile_rows - 1) // tile_rows) * tile_rows
    n_pad = rows_pad * _LANE
    num_chunks = rows_pad // tile_rows
    pad_count = n_pad - n

    pred_flat = conf_pred.reshape(-1)
    true_flat = conf_true.reshape(-1)
    if pad_count:
        # pred=1, true=1 in the pad => bce == 0 exactly in both paths; only the
        # R accumulator sees the pad and pad_count is subtracted at finalize.
        pred_flat = jnp.pad(pred_flat, (0, pad_count), constant_values=1.0)
        true_flat = jnp.pad(true_flat, (0, pad_count), constant_values=1.0)
    pred2 = pred_flat.reshape(rows_pad, _LANE)   # keep HBM dtype; cast in-kernel
    true2 = true_flat.reshape(rows_pad, _LANE)

    kernel = functools.partial(
        _confidence_loss_kernel, h=h, n=n, pad_count=pad_count,
        weighted=weighted, hard_targets=hard_targets)

    out = pl.pallas_call(
        kernel,
        out_shape=jax.ShapeDtypeStruct((1, 1), jnp.float32),
        grid=(num_chunks,),
        in_specs=[
            pl.BlockSpec((tile_rows, _LANE), lambda i: (i, 0)),
            pl.BlockSpec((tile_rows, _LANE), lambda i: (i, 0)),
        ],
        out_specs=pl.BlockSpec((1, 1), lambda i: (0, 0)),
        scratch_shapes=[
            pltpu.VMEM((1, 1), jnp.float32),   # A accumulator
            pltpu.VMEM((1, 1), jnp.float32),   # S accumulator
            pltpu.VMEM((1, 1), jnp.float32),   # R accumulator
        ],
        compiler_params=pltpu.CompilerParams(
            dimension_semantics=("arbitrary",),
            vmem_limit_bytes=32 * 1024 * 1024,
        ),
    )(pred2, true2)
    # TODO(synk): optional v7x-only 2-TC split (leading "parallel" axis with
    # per-core partial sums) not implemented; single-TC reduction here.
    return out[0, 0]


def _reference_loss(conf_pred, conf_true, weighted=True):
    """Pure-JAX reference mirroring the PyTorch module."""
    pred = conf_pred.astype(jnp.float32).reshape(-1)
    true = conf_true.astype(jnp.float32).reshape(-1)
    h = conf_pred.shape[0]
    log_p = jnp.maximum(jnp.log(pred), -100.0)
    log_1mp = jnp.maximum(jnp.log(1.0 - pred), -100.0)
    bce = -(true * log_p + (1.0 - true) * log_1mp)
    if weighted:
        r = jnp.sum(true)
        p1 = (h - r) / h
        p2 = r / h
        w = (p1 / jnp.where(r == 0.0, 1.0, r)) * true + (1.0 - true) * (p2 / h)
        w = jnp.where(r == 0.0, jnp.ones_like(true), w)
        bce = w * bce
    return jnp.mean(bce)


if __name__ == "__main__":
    key = jax.random.PRNGKey(0)
    k_pred, k_true = jax.random.split(key)

    # Small 1-D confidence vector (matches the module); 300 is deliberately not
    # a multiple of 8*128 so the padded-tail path is exercised.
    H = 300
    conf_pred = jax.random.uniform(k_pred, (H,), jnp.float32, minval=0.01, maxval=0.99)
    conf_true = jax.random.bernoulli(k_true, p=0.3, shape=(H,)).astype(jnp.float32)

    checks = []

    # weighted, single chunk
    loss_w = jax.block_until_ready(confidence_loss(conf_pred, conf_true, weighted=True))
    ref_w = _reference_loss(conf_pred, conf_true, weighted=True)
    checks.append((loss_w, ref_w, 1e-5))

    # unweighted
    loss_uw = jax.block_until_ready(confidence_loss(conf_pred, conf_true, weighted=False))
    ref_uw = _reference_loss(conf_pred, conf_true, weighted=False)
    checks.append((loss_uw, ref_uw, 1e-5))

    # hard-target (single-log) fast path
    loss_ht = jax.block_until_ready(
        confidence_loss(conf_pred, conf_true, weighted=True, hard_targets=True))
    checks.append((loss_ht, ref_w, 1e-5))

    # multi-chunk grid path (tiny block_rows forces several pipeline steps)
    H2 = 2500
    kp2, kt2 = jax.random.split(jax.random.PRNGKey(1))
    pred_b = jax.random.uniform(kp2, (H2,), jnp.float32, minval=0.01, maxval=0.99)
    true_b = jax.random.bernoulli(kt2, p=0.1, shape=(H2,)).astype(jnp.float32)
    loss_mc = jax.block_until_ready(
        confidence_loss(pred_b, true_b, weighted=True, block_rows=8))
    ref_mc = _reference_loss(pred_b, true_b, weighted=True)
    checks.append((loss_mc, ref_mc, 1e-5))

    # r == 0 fallback (all-negative targets, weighted path)
    true_zero = jnp.zeros((H,), jnp.float32)
    loss_z = jax.block_until_ready(confidence_loss(conf_pred, true_zero, weighted=True))
    ref_z = _reference_loss(conf_pred, true_zero, weighted=True)
    checks.append((loss_z, ref_z, 1e-5))

    # bf16 inputs stay bf16 in HBM, cast to f32 inside the kernel
    loss_bf = jax.block_until_ready(
        confidence_loss(conf_pred.astype(jnp.bfloat16), conf_true.astype(jnp.bfloat16)))
    ref_bf = _reference_loss(conf_pred.astype(jnp.bfloat16), conf_true.astype(jnp.bfloat16))
    checks.append((loss_bf, ref_bf, 1e-4))

    for got, want, tol in checks:
        np.testing.assert_allclose(np.asarray(got), np.asarray(want), rtol=tol, atol=tol)

    print("KERNEL_OK")
</pallas_src>

<mosaic_0001>
module attributes {stable_mosaic.version = 11 : i64} {
  func.func @_confidence_loss_kernel(%arg0: i32, %arg1: memref<8x128xf32, #tpu.memory_space<vmem>>, %arg2: memref<8x128xf32, #tpu.memory_space<vmem>>, %arg3: memref<1x1xf32, #tpu.memory_space<vmem>>, %arg4: memref<1x1xf32, #tpu.memory_space<vmem>>, %arg5: memref<1x1xf32, #tpu.memory_space<vmem>>, %arg6: memref<1x1xf32, #tpu.memory_space<vmem>>) attributes {dimension_semantics = [#tpu.dimension_semantics<arbitrary>], iteration_bounds = array<i64: 1>, scalar_prefetch = 0 : i64, scratch_operands = 3 : i64, tpu.core_type = #tpu.core_type<tc>, window_params = [{transform_indices = @transform_0, window_bounds = array<i64: 8, 128>}, {transform_indices = @transform_1, window_bounds = array<i64: 8, 128>}, {pipeline_mode = #tpu.pipeline_mode<synchronous>, transform_indices = @transform_2, window_bounds = array<i64: 1, 1>}]} {
    %c0_i32 = arith.constant 0 : i32
    %0 = arith.cmpi eq, %arg0, %c0_i32 : i32
    %1 = arith.extui %0 : i1 to i32
    %c0_i32_0 = arith.constant 0 : i32
    %2 = arith.cmpi ne, %1, %c0_i32_0 : i32
    scf.if %2 {
      %cst_23 = arith.constant 0.000000e+00 : f32
      %44 = vector.broadcast %cst_23 : f32 to vector<1x1xf32>
      %c0_24 = arith.constant 0 : index
      %c0_25 = arith.constant 0 : index
      %45 = vector.load %arg4[%c0_24, %c0_25] : memref<1x1xf32, #tpu.memory_space<vmem>>, vector<1x1xf32>
      tpu.vector_store %arg4[%c0_24, %c0_25], %44 {strides = array<i32>} : memref<1x1xf32, #tpu.memory_space<vmem>>, vector<1x1xf32>,
      %cst_26 = arith.constant 0.000000e+00 : f32
      %46 = vector.broadcast %cst_26 : f32 to vector<1x1xf32>
      %c0_27 = arith.constant 0 : index
      %c0_28 = arith.constant 0 : index
      %47 = vector.load %arg5[%c0_27, %c0_28] : memref<1x1xf32, #tpu.memory_space<vmem>>, vector<1x1xf32>
      tpu.vector_store %arg5[%c0_27, %c0_28], %46 {strides = array<i32>} : memref<1x1xf32, #tpu.memory_space<vmem>>, vector<1x1xf32>,
      %cst_29 = arith.constant 0.000000e+00 : f32
      %48 = vector.broadcast %cst_29 : f32 to vector<1x1xf32>
      %c0_30 = arith.constant 0 : index
      %c0_31 = arith.constant 0 : index
      %49 = vector.load %arg6[%c0_30, %c0_31] : memref<1x1xf32, #tpu.memory_space<vmem>>, vector<1x1xf32>
      tpu.vector_store %arg6[%c0_30, %c0_31], %48 {strides = array<i32>} : memref<1x1xf32, #tpu.memory_space<vmem>>, vector<1x1xf32>,
    } else {
    }
    %c0 = arith.constant 0 : index
    %c0_1 = arith.constant 0 : index
    %3 = vector.load %arg1[%c0, %c0_1] : memref<8x128xf32, #tpu.memory_space<vmem>>, vector<8x128xf32>
    %c0_2 = arith.constant 0 : index
    %c0_3 = arith.constant 0 : index
    %4 = vector.load %arg2[%c0_2, %c0_3] : memref<8x128xf32, #tpu.memory_space<vmem>>, vector<8x128xf32>
    %5 = math.log %3 : vector<8x128xf32>
    %cst = arith.constant -1.000000e+02 : f32
    %6 = vector.broadcast %cst : f32 to vector<8x128xf32>
    %7 = arith.maximumf %5, %6 : vector<8x128xf32>
    %cst_4 = arith.constant 1.000000e+00 : f32
    %8 = vector.broadcast %cst_4 : f32 to vector<8x128xf32>
    %9 = arith.subf %8, %3 : vector<8x128xf32>
    %10 = math.log %9 : vector<8x128xf32>
    %cst_5 = arith.constant -1.000000e+02 : f32
    %11 = vector.broadcast %cst_5 : f32 to vector<8x128xf32>
    %12 = arith.maximumf %10, %11 : vector<8x128xf32>
    %13 = arith.subf %7, %12 : vector<8x128xf32>
    %14 = arith.mulf %4, %13 : vector<8x128xf32>
    %15 = arith.addf %12, %14 : vector<8x128xf32>
    %c0_6 = arith.constant 0 : index
    %c0_7 = arith.constant 0 : index
    %16 = vector.load %arg5[%c0_6, %c0_7] : memref<1x1xf32, #tpu.memory_space<vmem>>, vector<1x1xf32>
    %17 = vector.shape_cast %15 : vector<8x128xf32> to vector<1x8x128xf32>
    %cst_8 = arith.constant dense<0.000000e+00> : vector<1xf32>
    %18 = vector.multi_reduction <add>, %17, %cst_8 [1, 2] : vector<1x8x128xf32> to vector<1xf32>
    %19 = vector.shape_cast %18 : vector<1xf32> to vector<1x1x1xf32>
    %20 = vector.extract %19[0, 0, 0] : f32 from vector<1x1x1xf32>
    %21 = vector.broadcast %20 : f32 to vector<1x1xf32>
    %22 = arith.addf %16, %21 : vector<1x1xf32>
    %c0_9 = arith.constant 0 : index
    %c0_10 = arith.constant 0 : index
    %23 = vector.load %arg5[%c0_9, %c0_10] : memref<1x1xf32, #tpu.memory_space<vmem>>, vector<1x1xf32>
    tpu.vector_store %arg5[%c0_9, %c0_10], %22 {strides = array<i32>} : memref<1x1xf32, #tpu.memory_space<vmem>>, vector<1x1xf32>,
    %c0_11 = arith.constant 0 : index
    %c0_12 = arith.constant 0 : index
    %24 = vector.load %arg4[%c0_11, %c0_12] : memref<1x1xf32, #tpu.memory_space<vmem>>, vector<1x1xf32>
    %25 = arith.mulf %4, %15 : vector<8x128xf32>
    %26 = vector.shape_cast %25 : vector<8x128xf32> to vector<1x8x128xf32>
    %cst_13 = arith.constant dense<0.000000e+00> : vector<1xf32>
    %27 = vector.multi_reduction <add>, %26, %cst_13 [1, 2] : vector<1x8x128xf32> to vector<1xf32>
    %28 = vector.shape_cast %27 : vector<1xf32> to vector<1x1x1xf32>
    %29 = vector.extract %28[0, 0, 0] : f32 from vector<1x1x1xf32>
    %30 = vector.broadcast %29 : f32 to vector<1x1xf32>
    %31 = arith.addf %24, %30 : vector<1x1xf32>
    %c0_14 = arith.constant 0 : index
    %c0_15 = arith.constant 0 : index
    %32 = vector.load %arg4[%c0_14, %c0_15] : memref<1x1xf32, #tpu.memory_space<vmem>>, vector<1x1xf32>
    tpu.vector_store %arg4[%c0_14, %c0_15], %31 {strides = array<i32>} : memref<1x1xf32, #tpu.memory_space<vmem>>, vector<1x1xf32>,
    %c0_16 = arith.constant 0 : index
    %c0_17 = arith.constant 0 : index
    %33 = vector.load %arg6[%c0_16, %c0_17] : memref<1x1xf32, #tpu.memory_space<vmem>>, vector<1x1xf32>
    %34 = vector.shape_cast %4 : vector<8x128xf32> to vector<1x8x128xf32>
    %cst_18 = arith.constant dense<0.000000e+00> : vector<1xf32>
    %35 = vector.multi_reduction <add>, %34, %cst_18 [1, 2] : vector<1x8x128xf32> to vector<1xf32>
    %36 = vector.shape_cast %35 : vector<1xf32> to vector<1x1x1xf32>
    %37 = vector.extract %36[0, 0, 0] : f32 from vector<1x1x1xf32>
    %38 = vector.broadcast %37 : f32 to vector<1x1xf32>
    %39 = arith.addf %33, %38 : vector<1x1xf32>
    %c0_19 = arith.constant 0 : index
    %c0_20 = arith.constant 0 : index
    %40 = vector.load %arg6[%c0_19, %c0_20] : memref<1x1xf32, #tpu.memory_space<vmem>>, vector<1x1xf32>
    tpu.vector_store %arg6[%c0_19, %c0_20], %39 {strides = array<i32>} : memref<1x1xf32, #tpu.memory_space<vmem>>, vector<1x1xf32>,
    %c0_i32_21 = arith.constant 0 : i32
    %41 = arith.cmpi eq, %arg0, %c0_i32_21 : i32
    %42 = arith.extui %41 : i1 to i32
    %c0_i32_22 = arith.constant 0 : i32
    %43 = arith.cmpi ne, %42, %c0_i32_22 : i32
    scf.if %43 {
      %c0_23 = arith.constant 0 : index
      %c0_24 = arith.constant 0 : index
      %44 = vector.load %arg5[%c0_23, %c0_24] : memref<1x1xf32, #tpu.memory_space<vmem>>, vector<1x1xf32>
      %c0_25 = arith.constant 0 : index
      %c0_26 = arith.constant 0 : index
      %45 = vector.load %arg4[%c0_25, %c0_26] : memref<1x1xf32, #tpu.memory_space<vmem>>, vector<1x1xf32>
      %c0_27 = arith.constant 0 : index
      %c0_28 = arith.constant 0 : index
      %46 = vector.load %arg6[%c0_27, %c0_28] : memref<1x1xf32, #tpu.memory_space<vmem>>, vector<1x1xf32>
      %cst_29 = arith.constant 7.240000e+02 : f32
      %47 = vector.broadcast %cst_29 : f32 to vector<1x1xf32>
      %48 = arith.subf %46, %47 : vector<1x1xf32>
      %49 = arith.subf %44, %45 : vector<1x1xf32>
      %cst_30 = arith.constant 0.000000e+00 : f32
      %50 = vector.broadcast %cst_30 : f32 to vector<1x1xf32>
      %51 = arith.cmpf oeq, %48, %50 : vector<1x1xf32>
      %cst_31 = arith.constant 1.000000e+00 : f32
      %52 = vector.broadcast %cst_31 : f32 to vector<1x1xf32>
      %53 = arith.select %51, %52, %48 : vector<1x1xi1>, vector<1x1xf32>
      %cst_32 = arith.constant 3.000000e+02 : f32
      %54 = vector.broadcast %cst_32 : f32 to vector<1x1xf32>
      %55 = arith.subf %54, %48 : vector<1x1xf32>
      %cst_33 = arith.constant 3.000000e+02 : f32
      %56 = vector.broadcast %cst_33 : f32 to vector<1x1xf32>
      %57 = arith.mulf %56, %53 : vector<1x1xf32>
      %58 = arith.divf %55, %57 : vector<1x1xf32>
      %cst_34 = arith.constant 1.000000e+00 : f32
      %59 = vector.broadcast %cst_34 : f32 to vector<1x1xf32>
      %60 = arith.select %51, %59, %58 : vector<1x1xi1>, vector<1x1xf32>
      %cst_35 = arith.constant 3.000000e+02 : f32
      %cst_36 = arith.constant 3.000000e+02 : f32
      %61 = arith.mulf %cst_35, %cst_36 : f32
      %62 = vector.broadcast %61 : f32 to vector<1x1xf32>
      %63 = arith.divf %48, %62 : vector<1x1xf32>
      %cst_37 = arith.constant 1.000000e+00 : f32
      %64 = vector.broadcast %cst_37 : f32 to vector<1x1xf32>
      %65 = arith.select %51, %64, %63 : vector<1x1xi1>, vector<1x1xf32>
      %66 = arith.mulf %60, %45 : vector<1x1xf32>
      %67 = arith.mulf %65, %49 : vector<1x1xf32>
      %68 = arith.addf %66, %67 : vector<1x1xf32>
      %cst_38 = arith.constant 0.000000e+00 : f32
      %69 = vector.broadcast %cst_38 : f32 to vector<1x1xf32>
      %70 = arith.subf %69, %68 : vector<1x1xf32>
      %cst_39 = arith.constant 3.000000e+02 : f32
      %71 = vector.broadcast %cst_39 : f32 to vector<1x1xf32>
      %72 = arith.divf %70, %71 : vector<1x1xf32>
      %c0_40 = arith.constant 0 : index
      %c0_41 = arith.constant 0 : index
      %73 = vector.load %arg3[%c0_40, %c0_41] : memref<1x1xf32, #tpu.memory_space<vmem>>, vector<1x1xf32>
      tpu.vector_store %arg3[%c0_40, %c0_41], %72 {strides = array<i32>} : memref<1x1xf32, #tpu.memory_space<vmem>>, vector<1x1xf32>,
    } else {
    }
    return
  }
  func.func @transform_0(%arg0: i32) -> (i32, i32) {
    %c0_i32 = arith.constant 0 : i32
    %c0_i32_0 = arith.constant 0 : i32
    return %arg0, %c0_i32 : i32, i32
  }
  func.func @transform_1(%arg0: i32) -> (i32, i32) {
    %c0_i32 = arith.constant 0 : i32
    %c0_i32_0 = arith.constant 0 : i32
    return %arg0, %c0_i32 : i32, i32
  }
  func.func @transform_2(%arg0: i32) -> (i32, i32) {
    %c0_i32 = arith.constant 0 : i32
    %c0_i32_0 = arith.constant 0 : i32
    %c0_i32_1 = arith.constant 0 : i32
    return %c0_i32, %c0_i32_0 : i32, i32
  }
}

</mosaic_0001>

<bundles_post_ra>
// kernel: tpu_custom_call.1
= control target key start
LH: loop header
LB: loop body
LE: loop exit
PB: predicated region body
PF: predicated region fallthrough
CT: control target
= control target key end

     0   :  { %7 = vsyncpa [#allocation6], 0  ;;  %s289_s0 = inlined_call_operand.hbm [shape: f32[8,128], index: 0, kind: input, shape index: {}]   ;;  %s290_s1 = inlined_call_operand.hbm [shape: f32[8,128], index: 1, kind: input, shape index: {}]   ;;  %s291_s2 = inlined_call_operand.hbm [shape: f32[1,1], index: 2, kind: output, shape index: {}]  }
   0x1   :  { %8 = vsyncpa [#allocation9], 0 }
   0x2   :  { %9 = vsyncpa [#allocation7], 0  ;;  %s227_s9 = smov [#allocation5]   ;;  %s228_s11 = smov [#allocation8]  }
   0x3   :  { %s16_s10 = sshll.u32 %s227_s9, 4  ;;  %s26_s12 = sshll.u32 %s228_s11, 4  ;;  %s17_s10 = int_to_ptr.vmem [resolvable:$true] %s16_s10  ;;  %s27_s12 = int_to_ptr.vmem [resolvable:$true] %s26_s12 }
   0x4   :  { %s155_s15 = scalar_lea.hbm %s289_s0, 128 }
   0x5   :  { %p156_p0 = scmp.ne.s32.totalorder %s289_s0, %s155_s15  ;;  %p159_p1 = scmp.lt.u32.totalorder %s155_s15, %s289_s0 }
   0x7   :  { %p161_p2 = pnand %p159_p1, %p156_p0 }
   0x9   :  { %164 = shalt.err (!%p161_p2)
}
   0xa   :  { %s165_s20 = scalar_lea.vmem %s17_s10, 128  ;;  %p170_p4 = scmp.lt.s32.totalorder %s17_s10, %s17_s10 }
   0xb   :  { %p166_p3 = scmp.ne.s32.totalorder %s17_s10, %s165_s20  ;;  %p171_p5 = scmp.lt.s32.totalorder %s165_s20, %s165_s20 }
   0xd   :  { %p172_p6 = por %p171_p5, %p170_p4 }
   0xf   :  { %p173_p7 = pnand %p172_p6, %p166_p3 }
  0x11   :  { %176 = shalt.err (!%p173_p7)
}
  0x12   :  { %19 = dma.hbm_to_vmem [thread:$0]  %s289_s0, 128, %s17_s10, [#allocation6]  }
  0x13   :  { %s177_s25 = scalar_lea.hbm %s290_s1, 128 }
  0x14   :  { %p178_p8 = scmp.ne.s32.totalorder %s290_s1, %s177_s25  ;;  %p181_p9 = scmp.lt.u32.totalorder %s177_s25, %s290_s1 }
  0x16   :  { %p183_p10 = pnand %p181_p9, %p178_p8 }
  0x18   :  { %186 = shalt.err (!%p183_p10)
}
  0x19   :  { %s187_s30 = scalar_lea.vmem %s27_s12, 128  ;;  %p192_p12 = scmp.lt.s32.totalorder %s27_s12, %s27_s12 }
  0x1a   :  { %p188_p11 = scmp.ne.s32.totalorder %s27_s12, %s187_s30  ;;  %p193_p13 = scmp.lt.s32.totalorder %s187_s30, %s187_s30 }
  0x1c   :  { %p194_p0 = por %p193_p13, %p192_p12 }
  0x1e   :  { %p195_p1 = pnand %p194_p0, %p188_p11 }
  0x20   :  { %198 = shalt.err (!%p195_p1)
}
  0x21   :  { %29 = dma.hbm_to_vmem [thread:$0]  %s290_s1, 128, %s27_s12, [#allocation9]  }
  0x22   :  { %221 = dma.done.wait [#allocation6], 128  }
  0x23   :  { %222 = vsyncadd [#allocation6], 4294967168 }
  0x24   :  { %223 = dma.done.wait [#allocation9], 128  }
  0x25   :  { %224 = vsyncadd [#allocation9], 4294967168  ;;  %v45_v0 = vld [vmem:[#allocation8] sm:$0xff]  ;;  %v44_v1 = vld [vmem:[#allocation5] sm:$0xff]  ;;  %vm40_vm0 = vcmask 0   ;;  %v229_v13 = vmov 0.0  }
  0x26   :  { %85 = vadd.xlane.f32.xlu1 %v45_v0  ;;  %149 = vlog2.f32 %v44_v1  ;;  %v49_v2 = vsub.f32 1.0, %v44_v1  ;;  %42 = vst.msk [vmem:[#allocation3] sm:$0x1] %vm40_vm0, %v229_v13  ;;  %41 = vst.msk [vmem:[#allocation2] sm:$0x1] %vm40_vm0, %v229_v13  ;;  %s230_s6 = smov [#allocation10]  }
  0x27   :  { %43 = vst.msk [vmem:[#allocation4] sm:$0x1] %vm40_vm0, %v229_v13  ;;  %s128_s7 = sshll.u32 %s230_s6, 4  ;;  %s129_s7 = int_to_ptr.vmem [resolvable:$true] %s128_s7 }
  0x28   :  { %151 = vlog2.f32 %v49_v2  ;;  %s199_s8 = scalar_lea.vmem %s129_s7, 16  ;;  %s203_s9 = scalar_lea.vmem %s129_s7, 32 }
  0x29   :  { %p200_p2 = scmp.ne.s32.totalorder %s129_s7, %s199_s8  ;;  %p204_p3 = scmp.lt.s32.totalorder %s129_s7, %s129_s7 }
  0x2a   :  { %p205_p4 = scmp.lt.s32.totalorder %s203_s9, %s199_s8 }
  0x2c   :  { %p206_p5 = por %p205_p4, %p204_p3 }
  0x2d   :  { %v56_v35 = vld [vmem:[#allocation3] sm:$0x1]  ;;  %v70_v38 = vld [vmem:[#allocation2] sm:$0x1] }
  0x2e   :  { %v84_v39 = vld [vmem:[#allocation4] sm:$0x1]  ;;  %p207_p6 = pnand %p206_p5, %p200_p2 }
  0x30   :  { %v150_v3 = vpop.eup %149 }
  0x31   :  { %v47_v4 = vmul.f32 0.6931472, %v150_v3 }
  0x32   :  { %v152_v5 = vpop.eup %151 }
  0x33   :  { %v48_v6 = vmax.f32 %v47_v4, -100.0  ;;  %v51_v7 = vmul.f32 0.6931472, %v152_v5 }
  0x35   :  { %v52_v8 = vmax.f32 %v51_v7, -100.0 }
  0x37   :  { %v53_v9 = vsub.f32 %v48_v6, %v52_v8 }
  0x39   :  { %v54_v10 = vmul.f32 %v53_v9, %v45_v0 }
  0x3b   :  { %v55_v11 = vadd.f32 %v54_v10, %v52_v8 }
  0x3d   :  { %57 = vadd.xlane.f32.xlu0 %v55_v11  ;;  %v71_v12 = vmul.f32 %v55_v11, %v45_v0 }
  0x41   :  { %72 = vadd.xlane.f32.xlu0 %v71_v12 }
  0xb3   :  { %v86_v14 = vpop.xlane.xlu1 %85 }
  0xb4   :  { %v87_v15 = vrot.slane %v86_v14, 4 }
  0xb6   :  { %v88_v16 = vadd.f32 %v87_v15, %v86_v14 }
  0xb8   :  { %v89_v20 = vrot.slane %v88_v16, 2 }
  0xba   :  { %v90_v26 = vadd.f32 %v89_v20, %v88_v16 }
  0xbc   :  { %v91_v31 = vrot.slane %v90_v26, 1 }
  0xbe   :  { %v92_v34 = vadd.f32 %v91_v31, %v90_v26 }
  0xca   :  { %v58_v17 = vpop.xlane.xlu0 %57 }
  0xcb   :  { %v59_v18 = vrot.slane %v58_v17, 4 }
  0xcd   :  { %v60_v19 = vadd.f32 %v59_v18, %v58_v17 }
  0xce   :  { %v73_v21 = vpop.xlane.xlu0 %72 }
  0xcf   :  { %v61_v22 = vrot.slane %v60_v19, 2  ;;  %v74_v23 = vrot.slane %v73_v21, 4 }
  0xd1   :  { %v75_v24 = vadd.f32 %v74_v23, %v73_v21  ;;  %v62_v25 = vadd.f32 %v61_v22, %v60_v19 }
  0xd3   :  { %v76_v27 = vrot.slane %v75_v24, 2  ;;  %v63_v28 = vrot.slane %v62_v25, 1 }
  0xd5   :  { %v77_v29 = vadd.f32 %v76_v27, %v75_v24  ;;  %v64_v30 = vadd.f32 %v63_v28, %v62_v25 }
  0xd7   :  { %139 = vpush %v64_v30  ;;  %v78_v32 = vrot.slane %v77_v29, 1 }
  0xd9   :  { %v79_v33 = vadd.f32 %v78_v32, %v77_v29 }
  0xdb   :  { %141 = vpush %v79_v33 }
  0xdc   :  { %143 = vpush %v92_v34 }
 0x108   :  { %s140_s1 = spop %139 }
 0x109   :  { %v66_v36 = vstv %s140_s1 }
 0x10a   :  { %v67_v37 = vadd.f32 %v66_v36, %v56_v35 }
 0x10c   :  { %69 = vst.msk [vmem:[#allocation3] sm:$0x1] %vm40_vm0, %v67_v37  ;;  %s142_s4 = spop %141 }
 0x10d   :  { %v81_v40 = vstv %s142_s4  ;;  %s144_s5 = spop %143 }
 0x10e   :  { %v82_v41 = vadd.f32 %v81_v40, %v70_v38  ;;  %v94_v42 = vstv %s144_s5 }
 0x10f   :  { %v95_v43 = vadd.f32 %v94_v42, %v84_v39 }
 0x110   :  { %83 = vst.msk [vmem:[#allocation2] sm:$0x1] %vm40_vm0, %v82_v41 }
 0x111   :  { %96 = vst.msk [vmem:[#allocation4] sm:$0x1] %vm40_vm0, %v95_v43 }
 0x113   :  { %v100_v52 = vld [vmem:[#allocation3] sm:$0x1] }
 0x117   :  { %v101_v49 = vld [vmem:[#allocation2] sm:$0x1] }
 0x118   :  { %v102_v44 = vld [vmem:[#allocation4] sm:$0x1]  ;;  %v104_v55 = vsub.f32 %v100_v52, %v101_v49 }
 0x119   :  { %v138_v45 = vadd.f32 -724.0, %v102_v44 }
 0x11b   :  { %vm105_vm1 = vcmp.eq.f32.partialorder %v138_v45, 0.0  ;;  %v113_v48 = vmul.f32 1.1111111e-05, %v138_v45  ;;  %v107_v50 = vsub.f32 300.0, %v138_v45 }
 0x11c   :  { %v106_v46 = vsel %vm105_vm1, 1.0, %v138_v45 }
 0x11d   :  { %v108_v47 = vmul.f32 300.0, %v106_v46  ;;  %v114_v54 = vsel %vm105_vm1, 1.0, %v113_v48 }
 0x11e   :  { %v116_v58 = vmul.f32 %v114_v54, %v104_v55 }
 0x11f   :  { %153 = vrcp.f32 %v108_v47 }
 0x129   :  { %v154_v51 = vpop.eup %153 }
 0x12a   :  { %v110_v53 = vmul.f32 %v154_v51, %v107_v50 }
 0x12c   :  { %v111_v56 = vsel %vm105_vm1, 1.0, %v110_v53 }
 0x12d   :  { %v115_v57 = vmul.f32 %v111_v56, %v101_v49 }
 0x12f   :  { %v117_v59 = vadd.f32 %v116_v58, %v115_v57 }
 0x131   :  { %v118_v60 = vsub.f32 0.0, %v117_v59 }
 0x133   :  { %v120_v61 = vmul.f32 0.0033333334, %v118_v60 }
 0x135   :  { %121 = vst.msk [vmem:[#allocation10] sm:$0x1] %vm40_vm0, %v120_v61 }
 0x136   :  { %210 = shalt.err (!%p207_p6)
}
 0x137   :  { %s211_s12 = scalar_lea.hbm %s291_s2, 16 }
 0x138   :  { %p212_p7 = scmp.ne.s32.totalorder %s291_s2, %s211_s12  ;;  %p215_p8 = scmp.lt.u32.totalorder %s211_s12, %s291_s2 }
 0x13a   :  { %p217_p9 = pnand %p215_p8, %p212_p7 }
 0x13c   :  { %220 = shalt.err (!%p217_p9)
}
 0x13d   :  { %131 = dma.vmem_to_hbm [thread:$0]  %s129_s7, 16, %s291_s2, [#allocation7]  }
 0x13e   :  { %225 = dma.done.wait [#allocation7], 16  }
 0x13f   :  { %226 = vsyncadd [#allocation7], 4294967280 }
 0x140   :  { %135 = vsyncpa [#allocation6], 1 }
 0x141   :  { %136 = vsyncpa [#allocation9], 1 }
 0x142   :  { %137 = vsyncpa [#allocation7], 1 }

</bundles_post_ra>
